<compile_context>
chip_gen: v7x
topology: tpu7x:2x2x1
jax: 0.10.0
libtpu: 0.0.40
codegen_flags: <defaults>
</compile_context>

<pallas_src>
import functools

import jax
import jax.numpy as jnp
from jax.experimental import pallas as pl
from jax.experimental.pallas import tpu as pltpu

EPS = 1e-5  # nn.BatchNorm2d default eps


def _vmem_limit(resident_bytes):
    # actual tile footprint * 2 (headroom for compiler-internal scratch),
    # clamped to [16 MiB, 56 MiB] (< v7x physical 64 MiB, safe on v5e/v6e too).
    return int(min(max(2 * resident_bytes + (4 << 20), 16 << 20), 56 << 20))


def _conv_block_kernel(x_ref, mask_ref, scale_ref, shift_ref, w_ref, b_ref,
                       y_ref, stats_ref, col_ref,
                       *, H, W, Cin, Cout, Nb, activate):
    """Nb images: [BN-affine + ReLU] -> pixel-major im2col (roll + mask)
    -> 3x3 conv as one MXU matmul per image -> + bias, plus lane-dense
    per-block BN partial stats.

    x_ref     : (Nb, Cin, P)      channel-major activation, P = H*W lanes
    mask_ref  : (9, P)            {0,1} border-validity mask per tap
    scale_ref : (Cin, 1)          gamma*rsqrt(var+eps) of previous BN
    shift_ref : (Cin, 1)          beta - mean*scale of previous BN
    w_ref     : (Cout, 9*Cin)     conv weights, rows = co, cols = (kh,kw,ci)
    b_ref     : (Cout, 1)         conv bias
    y_ref     : (Nb, Cout, P)     pre-BN conv output (channel-major, lane-dense)
    stats_ref : (1, 2*Cout, P)    per-block [sum; sum_sq] per-pixel partials
    col_ref   : VMEM (Nb, 9*Cin, P)  pixel-major im2col scratch
    """
    P = H * W
    x = x_ref[...]                                        # (Nb, Cin, P)
    if activate:
        # previous layer's BatchNorm (per-channel affine) + ReLU.
        x = jnp.maximum(x * scale_ref[...] + shift_ref[...], 0.0)

    x2 = x.reshape(Nb * Cin, P)                           # lane dim unchanged
    m = mask_ref[...]                                     # (9, P)

    # im2col, pixel-major: each tap is a lane rotation (XLU) of the flattened
    # pixel axis, zeroed at the image border via the static mask (VPU), then a
    # full-128-lane store into the col scratch.
    for kh in range(3):
        for kw in range(3):
            k = kh * 3 + kw
            d = (kh - 1) * W + (kw - 1)
            shifted = pltpu.roll(x2, shift=(-d) % P, axis=1) if d != 0 else x2
            tap = shifted * m[k:k + 1, :]                 # (Nb*Cin, P)
            col_ref[:, k * Cin:(k + 1) * Cin, :] = tap.reshape(Nb, Cin, P)

    # One (Cout, 9*Cin) x (9*Cin, P) matmul per image; the (Cout, P) result is
    # already in the lane-dense HBM layout.
    b = b_ref[...]                                        # (Cout, 1)
    s_acc = jnp.zeros((Cout, P), jnp.float32)
    q_acc = jnp.zeros((Cout, P), jnp.float32)
    for n in range(Nb):
        a = jnp.dot(w_ref[...], col_ref[n, :, :],
                    preferred_element_type=jnp.float32) + b   # (Cout, P)
        y_ref[n, :, :] = a
        s_acc = s_acc + a
        q_acc = q_acc + a * a

    # Lane-dense per-pixel BN partials; pixel/block reduction happens in the
    # wrapper (two-phase BN).
    stats_ref[0, 0:Cout, :] = s_acc
    stats_ref[0, Cout:2 * Cout, :] = q_acc


def _bn_relu_kernel(y_ref, scale_ref, shift_ref, out_ref):
    """Final BN affine + ReLU, fully lane-dense elementwise."""
    out_ref[...] = jnp.maximum(y_ref[...] * scale_ref[...] + shift_ref[...], 0.0)


def _conv_block(xf, mask, scale, shift, wf, bf, N, H, W, Cin, Cout, Nb,
                *, activate):
    P = H * W
    G = N // Nb
    kernel = functools.partial(_conv_block_kernel, H=H, W=W, Cin=Cin, Cout=Cout,
                               Nb=Nb, activate=activate)
    resident = 4 * (2 * Nb * Cin * P              # double-buffered input blocks
                    + 2 * Nb * Cout * P           # double-buffered output blocks
                    + 2 * 2 * Cout * P            # double-buffered stats blocks
                    + 9 * P                       # tap masks
                    + 2 * Cin + Cout * (9 * Cin + 1)   # affine + weights + bias
                    + Nb * 9 * Cin * P)           # im2col scratch
    y, stats = pl.pallas_call(
        kernel,
        out_shape=(jax.ShapeDtypeStruct((N, Cout, P), jnp.float32),
                   jax.ShapeDtypeStruct((G, 2 * Cout, P), jnp.float32)),
        grid_spec=pltpu.PrefetchScalarGridSpec(
            num_scalar_prefetch=0,
            grid=(G,),
            in_specs=[
                pl.BlockSpec((Nb, Cin, P), lambda g: (g, 0, 0)),
                pl.BlockSpec((9, P), lambda g: (0, 0)),
                pl.BlockSpec((Cin, 1), lambda g: (0, 0)),
                pl.BlockSpec((Cin, 1), lambda g: (0, 0)),
                pl.BlockSpec((Cout, 9 * Cin), lambda g: (0, 0)),
                pl.BlockSpec((Cout, 1), lambda g: (0, 0)),
            ],
            out_specs=[
                pl.BlockSpec((Nb, Cout, P), lambda g: (g, 0, 0)),
                pl.BlockSpec((1, 2 * Cout, P), lambda g: (g, 0, 0)),
            ],
            scratch_shapes=[pltpu.VMEM((Nb, 9 * Cin, P), jnp.float32)]),
        compiler_params=pltpu.CompilerParams(
            dimension_semantics=("parallel",),
            vmem_limit_bytes=_vmem_limit(resident)),
    )(xf, mask, scale, shift, wf, bf)
    return y, stats


def _bn_relu(yf, scale, shift, N, H, W, C, Nb):
    P = H * W
    G = N // Nb
    resident = 4 * (4 * Nb * C * P + 2 * C)
    return pl.pallas_call(
        _bn_relu_kernel,
        out_shape=jax.ShapeDtypeStruct((N, C, P), jnp.float32),
        grid_spec=pltpu.PrefetchScalarGridSpec(
            num_scalar_prefetch=0,
            grid=(G,),
            in_specs=[
                pl.BlockSpec((Nb, C, P), lambda g: (g, 0, 0)),
                pl.BlockSpec((C, 1), lambda g: (0, 0)),
                pl.BlockSpec((C, 1), lambda g: (0, 0)),
            ],
            out_specs=pl.BlockSpec((Nb, C, P), lambda g: (g, 0, 0))),
        compiler_params=pltpu.CompilerParams(
            dimension_semantics=("parallel",),
            vmem_limit_bytes=_vmem_limit(resident)),
    )(yf, scale, shift)


def _bn_affine(stats, count, gamma, beta):
    """Finalize training-mode BN from per-pixel [sum; sum_sq] partials."""
    C = gamma.shape[0]
    s = jnp.sum(stats[:, :C, :], axis=(0, 2))
    ss = jnp.sum(stats[:, C:, :], axis=(0, 2))
    mean = s / count
    var = jnp.maximum(ss / count - mean * mean, 0.0)   # clamp fp cancellation
    scale = gamma.astype(jnp.float32) * jax.lax.rsqrt(var + EPS)
    shift = beta.astype(jnp.float32) - mean * scale
    return scale.reshape(C, 1), shift.reshape(C, 1)


def _pick_nb(N, per_image_bytes, budget=4 << 20):
    nb = max(1, min(N, int(budget // max(per_image_bytes, 1))))
    if N >= 2:
        nb = min(nb, N // 2)   # keep grid >= 2: both v7x TensorCores get work
    nb = max(nb, 1)
    while N % nb:
        nb -= 1
    return nb


def _tap_masks(H, W):
    """(9, H*W) {0,1} validity masks for the 3x3 taps with zero padding."""
    hh = jnp.repeat(jnp.arange(H), W)
    ww = jnp.tile(jnp.arange(W), H)
    masks = []
    for kh in range(3):
        for kw in range(3):
            dy, dx = kh - 1, kw - 1
            masks.append((hh + dy >= 0) & (hh + dy < H)
                         & (ww + dx >= 0) & (ww + dx < W))
    return jnp.stack(masks).astype(jnp.float32)


def cnn_layer(x_nchw, params):
    """Matches CNN_layer.forward: (N, Cin, H, W) -> (N, Cout, H, W)."""
    w1, b1, g1, be1, w2, b2, g2, be2 = params
    N, Cin, H, W = x_nchw.shape
    Mid = w1.shape[-1]
    Cout = w2.shape[-1]
    P = H * W
    assert P % 128 == 0, "pixel count must be a multiple of 128 lanes"

    # NCHW maps directly onto the channel-major (N, C, H*W) kernel layout:
    # no transposes anywhere in the pipeline.
    xf = x_nchw.astype(jnp.float32).reshape(N, Cin, P)

    # conv weights (kh, kw, ci, co) -> (co, (kh*3 + kw)*Cin + ci)
    # TODO(synk): real PyTorch Conv2d weights are OIHW; they need
    #             w.transpose(2, 3, 1, 0) -> HWIO before this reshape.
    w1f = jnp.transpose(w1.astype(jnp.float32), (3, 0, 1, 2)).reshape(Mid, 9 * Cin)
    w2f = jnp.transpose(w2.astype(jnp.float32), (3, 0, 1, 2)).reshape(Cout, 9 * Mid)
    b1f = b1.astype(jnp.float32).reshape(Mid, 1)
    b2f = b2.astype(jnp.float32).reshape(Cout, 1)

    mask = _tap_masks(H, W)
    cmax = max(Cin, Mid, Cout)
    per_img = 4 * P * (2 * cmax + 9 * cmax + 4 * cmax)
    Nb = _pick_nb(N, per_img)
    count = N * H * W

    ones1 = jnp.ones((Cin, 1), jnp.float32)
    zeros1 = jnp.zeros((Cin, 1), jnp.float32)

    # conv1 (+ partial BN1 stats)
    y1, st1 = _conv_block(xf, mask, ones1, zeros1, w1f, b1f,
                          N, H, W, Cin, Mid, Nb, activate=False)
    sc1, sh1 = _bn_affine(st1, count, g1, be1)

    # BN1 + ReLU fused into conv2's input affine; conv2 (+ partial BN2 stats)
    y2, st2 = _conv_block(y1, mask, sc1, sh1, w2f, b2f,
                          N, H, W, Mid, Cout, Nb, activate=True)
    sc2, sh2 = _bn_affine(st2, count, g2, be2)

    # BN2 + ReLU (lane-dense elementwise kernel), output already NCHW-compatible.
    outf = _bn_relu(y2, sc2, sh2, N, H, W, Cout, Nb)
    return outf.reshape(N, Cout, H, W)


def init_params(key, in_cn, mid_cn, out_cm):
    k0, k1, k2, k3 = jax.random.split(key, 4)
    w1 = 0.1 * jax.random.normal(k0, (3, 3, in_cn, mid_cn), jnp.float32)
    b1 = 0.1 * jax.random.normal(k1, (mid_cn,), jnp.float32)
    g1 = jnp.ones((mid_cn,), jnp.float32)
    be1 = jnp.zeros((mid_cn,), jnp.float32)
    w2 = 0.1 * jax.random.normal(k2, (3, 3, mid_cn, out_cm), jnp.float32)
    b2 = 0.1 * jax.random.normal(k3, (out_cm,), jnp.float32)
    g2 = jnp.ones((out_cm,), jnp.float32)
    be2 = jnp.zeros((out_cm,), jnp.float32)
    return (w1, b1, g1, be1, w2, b2, g2, be2)


def _reference(x_nchw, params):
    """Pure-JAX reference of the PyTorch forward (training-mode BN)."""
    w1, b1, g1, be1, w2, b2, g2, be2 = params
    x = jnp.transpose(x_nchw, (0, 2, 3, 1)).astype(jnp.float32)
    dn = ("NHWC", "HWIO", "NHWC")

    def block(h, w, b, g, be):
        y = jax.lax.conv_general_dilated(h, w, (1, 1), "SAME",
                                         dimension_numbers=dn) + b
        m = jnp.mean(y, axis=(0, 1, 2))
        v = jnp.var(y, axis=(0, 1, 2))
        y = (y - m) * g * jax.lax.rsqrt(v + EPS) + be
        return jnp.maximum(y, 0.0)

    h = block(x, w1, b1, g1, be1)
    h = block(h, w2, b2, g2, be2)
    return jnp.transpose(h, (0, 3, 1, 2))


if __name__ == "__main__":
    in_cn, mid_cn, out_cm = 4, 8, 8
    key = jax.random.PRNGKey(0)
    kx, kp = jax.random.split(key)

    x = jax.random.normal(kx, (2, in_cn, 16, 16), jnp.float32)   # NCHW
    params = init_params(kp, in_cn, mid_cn, out_cm)

    fwd = jax.jit(cnn_layer)
    out = jax.block_until_ready(fwd(x, params))

    ref = _reference(x, params)
    assert out.shape == (2, out_cm, 16, 16)
    assert jnp.allclose(out, ref, atol=1e-3, rtol=1e-3)

    print("KERNEL_OK")
</pallas_src>

<mosaic_0001>
module attributes {stable_mosaic.version = 11 : i64} {
  func.func @_bn_relu_kernel(%arg0: i32, %arg1: memref<1x8x256xf32, #tpu.memory_space<vmem>>, %arg2: memref<8x1xf32, #tpu.memory_space<vmem>>, %arg3: memref<8x1xf32, #tpu.memory_space<vmem>>, %arg4: memref<1x8x256xf32, #tpu.memory_space<vmem>>) attributes {dimension_semantics = [#tpu.dimension_semantics<parallel>], iteration_bounds = array<i64: 2>, scalar_prefetch = 0 : i64, scratch_operands = 0 : i64, tpu.core_type = #tpu.core_type<tc>, window_params = [{transform_indices = @transform_0, window_bounds = array<i64: 1, 8, 256>}, {pipeline_mode = #tpu.pipeline_mode<synchronous>, transform_indices = @transform_1, window_bounds = array<i64: 8, 1>}, {pipeline_mode = #tpu.pipeline_mode<synchronous>, transform_indices = @transform_2, window_bounds = array<i64: 8, 1>}, {transform_indices = @transform_3, window_bounds = array<i64: 1, 8, 256>}]} {
    %c0 = arith.constant 0 : index
    %c0_0 = arith.constant 0 : index
    %c0_1 = arith.constant 0 : index
    %0 = vector.load %arg1[%c0, %c0_0, %c0_1] : memref<1x8x256xf32, #tpu.memory_space<vmem>>, vector<1x8x256xf32>
    %c0_2 = arith.constant 0 : index
    %c0_3 = arith.constant 0 : index
    %1 = vector.load %arg2[%c0_2, %c0_3] : memref<8x1xf32, #tpu.memory_space<vmem>>, vector<8x1xf32>
    %2 = vector.shape_cast %1 : vector<8x1xf32> to vector<1x8x1xf32>
    %3 = vector.broadcast %2 : vector<1x8x1xf32> to vector<1x8x256xf32>
    %4 = arith.mulf %0, %3 : vector<1x8x256xf32>
    %c0_4 = arith.constant 0 : index
    %c0_5 = arith.constant 0 : index
    %5 = vector.load %arg3[%c0_4, %c0_5] : memref<8x1xf32, #tpu.memory_space<vmem>>, vector<8x1xf32>
    %6 = vector.shape_cast %5 : vector<8x1xf32> to vector<1x8x1xf32>
    %7 = vector.broadcast %6 : vector<1x8x1xf32> to vector<1x8x256xf32>
    %8 = arith.addf %4, %7 : vector<1x8x256xf32>
    %cst = arith.constant 0.000000e+00 : f32
    %9 = vector.broadcast %cst : f32 to vector<1x8x256xf32>
    %10 = arith.maximumf %8, %9 : vector<1x8x256xf32>
    %c0_6 = arith.constant 0 : index
    %c0_7 = arith.constant 0 : index
    %c0_8 = arith.constant 0 : index
    %11 = vector.load %arg4[%c0_6, %c0_7, %c0_8] : memref<1x8x256xf32, #tpu.memory_space<vmem>>, vector<1x8x256xf32>
    tpu.vector_store %arg4[%c0_6, %c0_7, %c0_8], %10 {strides = array<i32>} : memref<1x8x256xf32, #tpu.memory_space<vmem>>, vector<1x8x256xf32>,
    return
  }
  func.func @transform_0(%arg0: i32) -> (i32, i32, i32) {
    %c0_i32 = arith.constant 0 : i32
    %c0_i32_0 = arith.constant 0 : i32
    %c0_i32_1 = arith.constant 0 : i32
    return %arg0, %c0_i32, %c0_i32_0 : i32, i32, i32
  }
  func.func @transform_1(%arg0: i32) -> (i32, i32) {
    %c0_i32 = arith.constant 0 : i32
    %c0_i32_0 = arith.constant 0 : i32
    %c0_i32_1 = arith.constant 0 : i32
    return %c0_i32, %c0_i32_0 : i32, i32
  }
  func.func @transform_2(%arg0: i32) -> (i32, i32) {
    %c0_i32 = arith.constant 0 : i32
    %c0_i32_0 = arith.constant 0 : i32
    %c0_i32_1 = arith.constant 0 : i32
    return %c0_i32, %c0_i32_0 : i32, i32
  }
  func.func @transform_3(%arg0: i32) -> (i32, i32, i32) {
    %c0_i32 = arith.constant 0 : i32
    %c0_i32_0 = arith.constant 0 : i32
    %c0_i32_1 = arith.constant 0 : i32
    return %arg0, %c0_i32, %c0_i32_0 : i32, i32, i32
  }
}

module attributes {stable_mosaic.version = 11 : i64} {
  func.func @_conv_block_kernel(%arg0: i32, %arg1: memref<1x4x256xf32, #tpu.memory_space<vmem>>, %arg2: memref<9x256xf32, #tpu.memory_space<vmem>>, %arg3: memref<4x1xf32, #tpu.memory_space<vmem>>, %arg4: memref<4x1xf32, #tpu.memory_space<vmem>>, %arg5: memref<8x36xf32, #tpu.memory_space<vmem>>, %arg6: memref<8x1xf32, #tpu.memory_space<vmem>>, %arg7: memref<1x8x256xf32, #tpu.memory_space<vmem>>, %arg8: memref<1x16x256xf32, #tpu.memory_space<vmem>>, %arg9: memref<1x36x256xf32, #tpu.memory_space<vmem>>) attributes {dimension_semantics = [#tpu.dimension_semantics<parallel>], iteration_bounds = array<i64: 2>, scalar_prefetch = 0 : i64, scratch_operands = 1 : i64, tpu.core_type = #tpu.core_type<tc>, window_params = [{transform_indices = @transform_0, window_bounds = array<i64: 1, 4, 256>}, {pipeline_mode = #tpu.pipeline_mode<synchronous>, transform_indices = @transform_1, window_bounds = array<i64: 9, 256>}, {pipeline_mode = #tpu.pipeline_mode<synchronous>, transform_indices = @transform_2, window_bounds = array<i64: 4, 1>}, {pipeline_mode = #tpu.pipeline_mode<synchronous>, transform_indices = @transform_3, window_bounds = array<i64: 4, 1>}, {pipeline_mode = #tpu.pipeline_mode<synchronous>, transform_indices = @transform_4, window_bounds = array<i64: 8, 36>}, {pipeline_mode = #tpu.pipeline_mode<synchronous>, transform_indices = @transform_5, window_bounds = array<i64: 8, 1>}, {transform_indices = @transform_6, window_bounds = array<i64: 1, 8, 256>}, {transform_indices = @transform_7, window_bounds = array<i64: 1, 16, 256>}]} {
    %c0 = arith.constant 0 : index
    %c0_0 = arith.constant 0 : index
    %c0_1 = arith.constant 0 : index
    %0 = vector.load %arg1[%c0, %c0_0, %c0_1] : memref<1x4x256xf32, #tpu.memory_space<vmem>>, vector<1x4x256xf32>
    %1 = vector.shape_cast %0 : vector<1x4x256xf32> to vector<4x256xf32>
    %c0_2 = arith.constant 0 : index
    %c0_3 = arith.constant 0 : index
    %2 = vector.load %arg2[%c0_2, %c0_3] : memref<9x256xf32, #tpu.memory_space<vmem>>, vector<9x256xf32>
    %c17_i32 = arith.constant 17 : i32
    %3 = tpu.dynamic_rotate %1 by %c17_i32 dim 1 : vector<4x256xf32>, i32 -> vector<4x256xf32>
    %4 = vector.extract_strided_slice %2 {offsets = [0, 0], sizes = [1, 256], strides = [1, 1]} : vector<9x256xf32> to vector<1x256xf32>
    %5 = vector.broadcast %4 : vector<1x256xf32> to vector<4x256xf32>
    %6 = arith.mulf %3, %5 : vector<4x256xf32>
    %7 = vector.shape_cast %6 : vector<4x256xf32> to vector<1x4x256xf32>
    %c0_4 = arith.constant 0 : index
    %c0_5 = arith.constant 0 : index
    %c0_6 = arith.constant 0 : index
    %8 = vector.load %arg9[%c0_4, %c0_5, %c0_6] : memref<1x36x256xf32, #tpu.memory_space<vmem>>, vector<1x4x256xf32>
    tpu.vector_store %arg9[%c0_4, %c0_5, %c0_6], %7 {strides = array<i32>} : memref<1x36x256xf32, #tpu.memory_space<vmem>>, vector<1x4x256xf32>,
    %c16_i32 = arith.constant 16 : i32
    %9 = tpu.dynamic_rotate %1 by %c16_i32 dim 1 : vector<4x256xf32>, i32 -> vector<4x256xf32>
    %10 = vector.extract_strided_slice %2 {offsets = [1, 0], sizes = [1, 256], strides = [1, 1]} : vector<9x256xf32> to vector<1x256xf32>
    %11 = vector.broadcast %10 : vector<1x256xf32> to vector<4x256xf32>
    %12 = arith.mulf %9, %11 : vector<4x256xf32>
    %13 = vector.shape_cast %12 : vector<4x256xf32> to vector<1x4x256xf32>
    %c0_7 = arith.constant 0 : index
    %c4 = arith.constant 4 : index
    %c0_8 = arith.constant 0 : index
    %14 = vector.load %arg9[%c0_7, %c4, %c0_8] : memref<1x36x256xf32, #tpu.memory_space<vmem>>, vector<1x4x256xf32>
    tpu.vector_store %arg9[%c0_7, %c4, %c0_8], %13 {strides = array<i32>} : memref<1x36x256xf32, #tpu.memory_space<vmem>>, vector<1x4x256xf32>,
    %c15_i32 = arith.constant 15 : i32
    %15 = tpu.dynamic_rotate %1 by %c15_i32 dim 1 : vector<4x256xf32>, i32 -> vector<4x256xf32>
    %16 = vector.extract_strided_slice %2 {offsets = [2, 0], sizes = [1, 256], strides = [1, 1]} : vector<9x256xf32> to vector<1x256xf32>
    %17 = vector.broadcast %16 : vector<1x256xf32> to vector<4x256xf32>
    %18 = arith.mulf %15, %17 : vector<4x256xf32>
    %19 = vector.shape_cast %18 : vector<4x256xf32> to vector<1x4x256xf32>
    %c0_9 = arith.constant 0 : index
    %c8 = arith.constant 8 : index
    %c0_10 = arith.constant 0 : index
    %20 = vector.load %arg9[%c0_9, %c8, %c0_10] : memref<1x36x256xf32, #tpu.memory_space<vmem>>, vector<1x4x256xf32>
    tpu.vector_store %arg9[%c0_9, %c8, %c0_10], %19 {strides = array<i32>} : memref<1x36x256xf32, #tpu.memory_space<vmem>>, vector<1x4x256xf32>,
    %c1_i32 = arith.constant 1 : i32
    %21 = tpu.dynamic_rotate %1 by %c1_i32 dim 1 : vector<4x256xf32>, i32 -> vector<4x256xf32>
    %22 = vector.extract_strided_slice %2 {offsets = [3, 0], sizes = [1, 256], strides = [1, 1]} : vector<9x256xf32> to vector<1x256xf32>
    %23 = vector.broadcast %22 : vector<1x256xf32> to vector<4x256xf32>
    %24 = arith.mulf %21, %23 : vector<4x256xf32>
    %25 = vector.shape_cast %24 : vector<4x256xf32> to vector<1x4x256xf32>
    %c0_11 = arith.constant 0 : index
    %c12 = arith.constant 12 : index
    %c0_12 = arith.constant 0 : index
    %26 = vector.load %arg9[%c0_11, %c12, %c0_12] : memref<1x36x256xf32, #tpu.memory_space<vmem>>, vector<1x4x256xf32>
    tpu.vector_store %arg9[%c0_11, %c12, %c0_12], %25 {strides = array<i32>} : memref<1x36x256xf32, #tpu.memory_space<vmem>>, vector<1x4x256xf32>,
    %27 = vector.extract_strided_slice %2 {offsets = [4, 0], sizes = [1, 256], strides = [1, 1]} : vector<9x256xf32> to vector<1x256xf32>
    %28 = vector.broadcast %27 : vector<1x256xf32> to vector<4x256xf32>
    %29 = arith.mulf %1, %28 : vector<4x256xf32>
    %30 = vector.shape_cast %29 : vector<4x256xf32> to vector<1x4x256xf32>
    %c0_13 = arith.constant 0 : index
    %c16 = arith.constant 16 : index
    %c0_14 = arith.constant 0 : index
    %31 = vector.load %arg9[%c0_13, %c16, %c0_14] : memref<1x36x256xf32, #tpu.memory_space<vmem>>, vector<1x4x256xf32>
    tpu.vector_store %arg9[%c0_13, %c16, %c0_14], %30 {strides = array<i32>} : memref<1x36x256xf32, #tpu.memory_space<vmem>>, vector<1x4x256xf32>,
    %c255_i32 = arith.constant 255 : i32
    %32 = tpu.dynamic_rotate %1 by %c255_i32 dim 1 : vector<4x256xf32>, i32 -> vector<4x256xf32>
    %33 = vector.extract_strided_slice %2 {offsets = [5, 0], sizes = [1, 256], strides = [1, 1]} : vector<9x256xf32> to vector<1x256xf32>
    %34 = vector.broadcast %33 : vector<1x256xf32> to vector<4x256xf32>
    %35 = arith.mulf %32, %34 : vector<4x256xf32>
    %36 = vector.shape_cast %35 : vector<4x256xf32> to vector<1x4x256xf32>
    %c0_15 = arith.constant 0 : index
    %c20 = arith.constant 20 : index
    %c0_16 = arith.constant 0 : index
    %37 = vector.load %arg9[%c0_15, %c20, %c0_16] : memref<1x36x256xf32, #tpu.memory_space<vmem>>, vector<1x4x256xf32>
    tpu.vector_store %arg9[%c0_15, %c20, %c0_16], %36 {strides = array<i32>} : memref<1x36x256xf32, #tpu.memory_space<vmem>>, vector<1x4x256xf32>,
    %c241_i32 = arith.constant 241 : i32
    %38 = tpu.dynamic_rotate %1 by %c241_i32 dim 1 : vector<4x256xf32>, i32 -> vector<4x256xf32>
    %39 = vector.extract_strided_slice %2 {offsets = [6, 0], sizes = [1, 256], strides = [1, 1]} : vector<9x256xf32> to vector<1x256xf32>
    %40 = vector.broadcast %39 : vector<1x256xf32> to vector<4x256xf32>
    %41 = arith.mulf %38, %40 : vector<4x256xf32>
    %42 = vector.shape_cast %41 : vector<4x256xf32> to vector<1x4x256xf32>
    %c0_17 = arith.constant 0 : index
    %c24 = arith.constant 24 : index
    %c0_18 = arith.constant 0 : index
    %43 = vector.load %arg9[%c0_17, %c24, %c0_18] : memref<1x36x256xf32, #tpu.memory_space<vmem>>, vector<1x4x256xf32>
    tpu.vector_store %arg9[%c0_17, %c24, %c0_18], %42 {strides = array<i32>} : memref<1x36x256xf32, #tpu.memory_space<vmem>>, vector<1x4x256xf32>,
    %c240_i32 = arith.constant 240 : i32
    %44 = tpu.dynamic_rotate %1 by %c240_i32 dim 1 : vector<4x256xf32>, i32 -> vector<4x256xf32>
    %45 = vector.extract_strided_slice %2 {offsets = [7, 0], sizes = [1, 256], strides = [1, 1]} : vector<9x256xf32> to vector<1x256xf32>
    %46 = vector.broadcast %45 : vector<1x256xf32> to vector<4x256xf32>
    %47 = arith.mulf %44, %46 : vector<4x256xf32>
    %48 = vector.shape_cast %47 : vector<4x256xf32> to vector<1x4x256xf32>
    %c0_19 = arith.constant 0 : index
    %c28 = arith.constant 28 : index
    %c0_20 = arith.constant 0 : index
    %49 = vector.load %arg9[%c0_19, %c28, %c0_20] : memref<1x36x256xf32, #tpu.memory_space<vmem>>, vector<1x4x256xf32>
    tpu.vector_store %arg9[%c0_19, %c28, %c0_20], %48 {strides = array<i32>} : memref<1x36x256xf32, #tpu.memory_space<vmem>>, vector<1x4x256xf32>,
    %c239_i32 = arith.constant 239 : i32
    %50 = tpu.dynamic_rotate %1 by %c239_i32 dim 1 : vector<4x256xf32>, i32 -> vector<4x256xf32>
    %51 = vector.extract_strided_slice %2 {offsets = [8, 0], sizes = [1, 256], strides = [1, 1]} : vector<9x256xf32> to vector<1x256xf32>
    %52 = vector.broadcast %51 : vector<1x256xf32> to vector<4x256xf32>
    %53 = arith.mulf %50, %52 : vector<4x256xf32>
    %54 = vector.shape_cast %53 : vector<4x256xf32> to vector<1x4x256xf32>
    %c0_21 = arith.constant 0 : index
    %c32 = arith.constant 32 : index
    %c0_22 = arith.constant 0 : index
    %55 = vector.load %arg9[%c0_21, %c32, %c0_22] : memref<1x36x256xf32, #tpu.memory_space<vmem>>, vector<1x4x256xf32>
    tpu.vector_store %arg9[%c0_21, %c32, %c0_22], %54 {strides = array<i32>} : memref<1x36x256xf32, #tpu.memory_space<vmem>>, vector<1x4x256xf32>,
    %c0_23 = arith.constant 0 : index
    %c0_24 = arith.constant 0 : index
    %56 = vector.load %arg6[%c0_23, %c0_24] : memref<8x1xf32, #tpu.memory_space<vmem>>, vector<8x1xf32>
    %cst = arith.constant 0.000000e+00 : f32
    %57 = vector.broadcast %cst : f32 to vector<8x256xf32>
    %cst_25 = arith.constant 0.000000e+00 : f32
    %58 = vector.broadcast %cst_25 : f32 to vector<8x256xf32>
    %c0_26 = arith.constant 0 : index
    %c0_27 = arith.constant 0 : index
    %59 = vector.load %arg5[%c0_26, %c0_27] : memref<8x36xf32, #tpu.memory_space<vmem>>, vector<8x36xf32>
    %c0_28 = arith.constant 0 : index
    %c0_29 = arith.constant 0 : index
    %c0_30 = arith.constant 0 : index
    %60 = vector.load %arg9[%c0_28, %c0_29, %c0_30] : memref<1x36x256xf32, #tpu.memory_space<vmem>>, vector<1x36x256xf32>
    %61 = vector.shape_cast %60 : vector<1x36x256xf32> to vector<36x256xf32>
    %cst_31 = arith.constant dense<0.000000e+00> : vector<8x256xf32>
    %62 = tpu.matmul %59, %61, %cst_31 {dimension_numbers = #tpu.dot_dimension_numbers<[1], [0], [0], [1], [0, 0, 1, 1], [], []>} : vector<8x36xf32>, vector<36x256xf32>, vector<8x256xf32> -> vector<8x256xf32>
    %63 = vector.broadcast %56 : vector<8x1xf32> to vector<8x256xf32>
    %64 = arith.addf %62, %63 : vector<8x256xf32>
    %c0_32 = arith.constant 0 : index
    %c0_33 = arith.constant 0 : index
    %c0_34 = arith.constant 0 : index
    %65 = vector.load %arg7[%c0_32, %c0_33, %c0_34] : memref<1x8x256xf32, #tpu.memory_space<vmem>>, vector<1x8x256xf32>
    %66 = vector.shape_cast %65 : vector<1x8x256xf32> to vector<8x256xf32>
    %67 = vector.shape_cast %64 : vector<8x256xf32> to vector<1x8x256xf32>
    tpu.vector_store %arg7[%c0_32, %c0_33, %c0_34], %67 {strides = array<i32>} : memref<1x8x256xf32, #tpu.memory_space<vmem>>, vector<1x8x256xf32>,
    %68 = arith.addf %57, %64 : vector<8x256xf32>
    %69 = arith.mulf %64, %64 : vector<8x256xf32>
    %70 = arith.addf %58, %69 : vector<8x256xf32>
    %c0_35 = arith.constant 0 : index
    %c0_36 = arith.constant 0 : index
    %c0_37 = arith.constant 0 : index
    %71 = vector.load %arg8[%c0_35, %c0_36, %c0_37] : memref<1x16x256xf32, #tpu.memory_space<vmem>>, vector<1x8x256xf32>
    %72 = vector.shape_cast %71 : vector<1x8x256xf32> to vector<8x256xf32>
    %73 = vector.shape_cast %68 : vector<8x256xf32> to vector<1x8x256xf32>
    tpu.vector_store %arg8[%c0_35, %c0_36, %c0_37], %73 {strides = array<i32>} : memref<1x16x256xf32, #tpu.memory_space<vmem>>, vector<1x8x256xf32>,
    %c0_38 = arith.constant 0 : index
    %c8_39 = arith.constant 8 : index
    %c0_40 = arith.constant 0 : index
    %74 = vector.load %arg8[%c0_38, %c8_39, %c0_40] : memref<1x16x256xf32, #tpu.memory_space<vmem>>, vector<1x8x256xf32>
    %75 = vector.shape_cast %74 : vector<1x8x256xf32> to vector<8x256xf32>
    %76 = vector.shape_cast %70 : vector<8x256xf32> to vector<1x8x256xf32>
    tpu.vector_store %arg8[%c0_38, %c8_39, %c0_40], %76 {strides = array<i32>} : memref<1x16x256xf32, #tpu.memory_space<vmem>>, vector<1x8x256xf32>,
    return
  }
  func.func @transform_0(%arg0: i32) -> (i32, i32, i32) {
    %c0_i32 = arith.constant 0 : i32
    %c0_i32_0 = arith.constant 0 : i32
    %c0_i32_1 = arith.constant 0 : i32
    return %arg0, %c0_i32, %c0_i32_0 : i32, i32, i32
  }
  func.func @transform_1(%arg0: i32) -> (i32, i32) {
    %c0_i32 = arith.constant 0 : i32
    %c0_i32_0 = arith.constant 0 : i32
    %c0_i32_1 = arith.constant 0 : i32
    return %c0_i32, %c0_i32_0 : i32, i32
  }
  func.func @transform_2(%arg0: i32) -> (i32, i32) {
    %c0_i32 = arith.constant 0 : i32
    %c0_i32_0 = arith.constant 0 : i32
    %c0_i32_1 = arith.constant 0 : i32
    return %c0_i32, %c0_i32_0 : i32, i32
  }
  func.func @transform_3(%arg0: i32) -> (i32, i32) {
    %c0_i32 = arith.constant 0 : i32
    %c0_i32_0 = arith.constant 0 : i32
    %c0_i32_1 = arith.constant 0 : i32
    return %c0_i32, %c0_i32_0 : i32, i32
  }
  func.func @transform_4(%arg0: i32) -> (i32, i32) {
    %c0_i32 = arith.constant 0 : i32
    %c0_i32_0 = arith.constant 0 : i32
    %c0_i32_1 = arith.constant 0 : i32
    return %c0_i32, %c0_i32_0 : i32, i32
  }
  func.func @transform_5(%arg0: i32) -> (i32, i32) {
    %c0_i32 = arith.constant 0 : i32
    %c0_i32_0 = arith.constant 0 : i32
    %c0_i32_1 = arith.constant 0 : i32
    return %c0_i32, %c0_i32_0 : i32, i32
  }
  func.func @transform_6(%arg0: i32) -> (i32, i32, i32) {
    %c0_i32 = arith.constant 0 : i32
    %c0_i32_0 = arith.constant 0 : i32
    %c0_i32_1 = arith.constant 0 : i32
    return %arg0, %c0_i32, %c0_i32_0 : i32, i32, i32
  }
  func.func @transform_7(%arg0: i32) -> (i32, i32, i32) {
    %c0_i32 = arith.constant 0 : i32
    %c0_i32_0 = arith.constant 0 : i32
    %c0_i32_1 = arith.constant 0 : i32
    return %arg0, %c0_i32, %c0_i32_0 : i32, i32, i32
  }
}

module attributes {stable_mosaic.version = 11 : i64} {
  func.func @_conv_block_kernel(%arg0: i32, %arg1: memref<1x8x256xf32, #tpu.memory_space<vmem>>, %arg2: memref<9x256xf32, #tpu.memory_space<vmem>>, %arg3: memref<8x1xf32, #tpu.memory_space<vmem>>, %arg4: memref<8x1xf32, #tpu.memory_space<vmem>>, %arg5: memref<8x72xf32, #tpu.memory_space<vmem>>, %arg6: memref<8x1xf32, #tpu.memory_space<vmem>>, %arg7: memref<1x8x256xf32, #tpu.memory_space<vmem>>, %arg8: memref<1x16x256xf32, #tpu.memory_space<vmem>>, %arg9: memref<1x72x256xf32, #tpu.memory_space<vmem>>) attributes {dimension_semantics = [#tpu.dimension_semantics<parallel>], iteration_bounds = array<i64: 2>, scalar_prefetch = 0 : i64, scratch_operands = 1 : i64, tpu.core_type = #tpu.core_type<tc>, window_params = [{transform_indices = @transform_0, window_bounds = array<i64: 1, 8, 256>}, {pipeline_mode = #tpu.pipeline_mode<synchronous>, transform_indices = @transform_1, window_bounds = array<i64: 9, 256>}, {pipeline_mode = #tpu.pipeline_mode<synchronous>, transform_indices = @transform_2, window_bounds = array<i64: 8, 1>}, {pipeline_mode = #tpu.pipeline_mode<synchronous>, transform_indices = @transform_3, window_bounds = array<i64: 8, 1>}, {pipeline_mode = #tpu.pipeline_mode<synchronous>, transform_indices = @transform_4, window_bounds = array<i64: 8, 72>}, {pipeline_mode = #tpu.pipeline_mode<synchronous>, transform_indices = @transform_5, window_bounds = array<i64: 8, 1>}, {transform_indices = @transform_6, window_bounds = array<i64: 1, 8, 256>}, {transform_indices = @transform_7, window_bounds = array<i64: 1, 16, 256>}]} {
    %c0 = arith.constant 0 : index
    %c0_0 = arith.constant 0 : index
    %c0_1 = arith.constant 0 : index
    %0 = vector.load %arg1[%c0, %c0_0, %c0_1] : memref<1x8x256xf32, #tpu.memory_space<vmem>>, vector<1x8x256xf32>
    %c0_2 = arith.constant 0 : index
    %c0_3 = arith.constant 0 : index
    %1 = vector.load %arg3[%c0_2, %c0_3] : memref<8x1xf32, #tpu.memory_space<vmem>>, vector<8x1xf32>
    %2 = vector.shape_cast %1 : vector<8x1xf32> to vector<1x8x1xf32>
    %3 = vector.broadcast %2 : vector<1x8x1xf32> to vector<1x8x256xf32>
    %4 = arith.mulf %0, %3 : vector<1x8x256xf32>
    %c0_4 = arith.constant 0 : index
    %c0_5 = arith.constant 0 : index
    %5 = vector.load %arg4[%c0_4, %c0_5] : memref<8x1xf32, #tpu.memory_space<vmem>>, vector<8x1xf32>
    %6 = vector.shape_cast %5 : vector<8x1xf32> to vector<1x8x1xf32>
    %7 = vector.broadcast %6 : vector<1x8x1xf32> to vector<1x8x256xf32>
    %8 = arith.addf %4, %7 : vector<1x8x256xf32>
    %cst = arith.constant 0.000000e+00 : f32
    %9 = vector.broadcast %cst : f32 to vector<1x8x256xf32>
    %10 = arith.maximumf %8, %9 : vector<1x8x256xf32>
    %11 = vector.shape_cast %10 : vector<1x8x256xf32> to vector<8x256xf32>
    %c0_6 = arith.constant 0 : index
    %c0_7 = arith.constant 0 : index
    %12 = vector.load %arg2[%c0_6, %c0_7] : memref<9x256xf32, #tpu.memory_space<vmem>>, vector<9x256xf32>
    %c17_i32 = arith.constant 17 : i32
    %13 = tpu.dynamic_rotate %11 by %c17_i32 dim 1 : vector<8x256xf32>, i32 -> vector<8x256xf32>
    %14 = vector.extract_strided_slice %12 {offsets = [0, 0], sizes = [1, 256], strides = [1, 1]} : vector<9x256xf32> to vector<1x256xf32>
    %15 = vector.broadcast %14 : vector<1x256xf32> to vector<8x256xf32>
    %16 = arith.mulf %13, %15 : vector<8x256xf32>
    %17 = vector.shape_cast %16 : vector<8x256xf32> to vector<1x8x256xf32>
    %c0_8 = arith.constant 0 : index
    %c0_9 = arith.constant 0 : index
    %c0_10 = arith.constant 0 : index
    %18 = vector.load %arg9[%c0_8, %c0_9, %c0_10] : memref<1x72x256xf32, #tpu.memory_space<vmem>>, vector<1x8x256xf32>
    tpu.vector_store %arg9[%c0_8, %c0_9, %c0_10], %17 {strides = array<i32>} : memref<1x72x256xf32, #tpu.memory_space<vmem>>, vector<1x8x256xf32>,
    %c16_i32 = arith.constant 16 : i32
    %19 = tpu.dynamic_rotate %11 by %c16_i32 dim 1 : vector<8x256xf32>, i32 -> vector<8x256xf32>
    %20 = vector.extract_strided_slice %12 {offsets = [1, 0], sizes = [1, 256], strides = [1, 1]} : vector<9x256xf32> to vector<1x256xf32>
    %21 = vector.broadcast %20 : vector<1x256xf32> to vector<8x256xf32>
    %22 = arith.mulf %19, %21 : vector<8x256xf32>
    %23 = vector.shape_cast %22 : vector<8x256xf32> to vector<1x8x256xf32>
    %c0_11 = arith.constant 0 : index
    %c8 = arith.constant 8 : index
    %c0_12 = arith.constant 0 : index
    %24 = vector.load %arg9[%c0_11, %c8, %c0_12] : memref<1x72x256xf32, #tpu.memory_space<vmem>>, vector<1x8x256xf32>
    tpu.vector_store %arg9[%c0_11, %c8, %c0_12], %23 {strides = array<i32>} : memref<1x72x256xf32, #tpu.memory_space<vmem>>, vector<1x8x256xf32>,
    %c15_i32 = arith.constant 15 : i32
    %25 = tpu.dynamic_rotate %11 by %c15_i32 dim 1 : vector<8x256xf32>, i32 -> vector<8x256xf32>
    %26 = vector.extract_strided_slice %12 {offsets = [2, 0], sizes = [1, 256], strides = [1, 1]} : vector<9x256xf32> to vector<1x256xf32>
    %27 = vector.broadcast %26 : vector<1x256xf32> to vector<8x256xf32>
    %28 = arith.mulf %25, %27 : vector<8x256xf32>
    %29 = vector.shape_cast %28 : vector<8x256xf32> to vector<1x8x256xf32>
    %c0_13 = arith.constant 0 : index
    %c16 = arith.constant 16 : index
    %c0_14 = arith.constant 0 : index
    %30 = vector.load %arg9[%c0_13, %c16, %c0_14] : memref<1x72x256xf32, #tpu.memory_space<vmem>>, vector<1x8x256xf32>
    tpu.vector_store %arg9[%c0_13, %c16, %c0_14], %29 {strides = array<i32>} : memref<1x72x256xf32, #tpu.memory_space<vmem>>, vector<1x8x256xf32>,
    %c1_i32 = arith.constant 1 : i32
    %31 = tpu.dynamic_rotate %11 by %c1_i32 dim 1 : vector<8x256xf32>, i32 -> vector<8x256xf32>
    %32 = vector.extract_strided_slice %12 {offsets = [3, 0], sizes = [1, 256], strides = [1, 1]} : vector<9x256xf32> to vector<1x256xf32>
    %33 = vector.broadcast %32 : vector<1x256xf32> to vector<8x256xf32>
    %34 = arith.mulf %31, %33 : vector<8x256xf32>
    %35 = vector.shape_cast %34 : vector<8x256xf32> to vector<1x8x256xf32>
    %c0_15 = arith.constant 0 : index
    %c24 = arith.constant 24 : index
    %c0_16 = arith.constant 0 : index
    %36 = vector.load %arg9[%c0_15, %c24, %c0_16] : memref<1x72x256xf32, #tpu.memory_space<vmem>>, vector<1x8x256xf32>
    tpu.vector_store %arg9[%c0_15, %c24, %c0_16], %35 {strides = array<i32>} : memref<1x72x256xf32, #tpu.memory_space<vmem>>, vector<1x8x256xf32>,
    %37 = vector.extract_strided_slice %12 {offsets = [4, 0], sizes = [1, 256], strides = [1, 1]} : vector<9x256xf32> to vector<1x256xf32>
    %38 = vector.broadcast %37 : vector<1x256xf32> to vector<8x256xf32>
    %39 = arith.mulf %11, %38 : vector<8x256xf32>
    %40 = vector.shape_cast %39 : vector<8x256xf32> to vector<1x8x256xf32>
    %c0_17 = arith.constant 0 : index
    %c32 = arith.constant 32 : index
    %c0_18 = arith.constant 0 : index
    %41 = vector.load %arg9[%c0_17, %c32, %c0_18] : memref<1x72x256xf32, #tpu.memory_space<vmem>>, vector<1x8x256xf32>
    tpu.vector_store %arg9[%c0_17, %c32, %c0_18], %40 {strides = array<i32>} : memref<1x72x256xf32, #tpu.memory_space<vmem>>, vector<1x8x256xf32>,
    %c255_i32 = arith.constant 255 : i32
    %42 = tpu.dynamic_rotate %11 by %c255_i32 dim 1 : vector<8x256xf32>, i32 -> vector<8x256xf32>
    %43 = vector.extract_strided_slice %12 {offsets = [5, 0], sizes = [1, 256], strides = [1, 1]} : vector<9x256xf32> to vector<1x256xf32>
    %44 = vector.broadcast %43 : vector<1x256xf32> to vector<8x256xf32>
    %45 = arith.mulf %42, %44 : vector<8x256xf32>
    %46 = vector.shape_cast %45 : vector<8x256xf32> to vector<1x8x256xf32>
    %c0_19 = arith.constant 0 : index
    %c40 = arith.constant 40 : index
    %c0_20 = arith.constant 0 : index
    %47 = vector.load %arg9[%c0_19, %c40, %c0_20] : memref<1x72x256xf32, #tpu.memory_space<vmem>>, vector<1x8x256xf32>
    tpu.vector_store %arg9[%c0_19, %c40, %c0_20], %46 {strides = array<i32>} : memref<1x72x256xf32, #tpu.memory_space<vmem>>, vector<1x8x256xf32>,
    %c241_i32 = arith.constant 241 : i32
    %48 = tpu.dynamic_rotate %11 by %c241_i32 dim 1 : vector<8x256xf32>, i32 -> vector<8x256xf32>
    %49 = vector.extract_strided_slice %12 {offsets = [6, 0], sizes = [1, 256], strides = [1, 1]} : vector<9x256xf32> to vector<1x256xf32>
    %50 = vector.broadcast %49 : vector<1x256xf32> to vector<8x256xf32>
    %51 = arith.mulf %48, %50 : vector<8x256xf32>
    %52 = vector.shape_cast %51 : vector<8x256xf32> to vector<1x8x256xf32>
    %c0_21 = arith.constant 0 : index
    %c48 = arith.constant 48 : index
    %c0_22 = arith.constant 0 : index
    %53 = vector.load %arg9[%c0_21, %c48, %c0_22] : memref<1x72x256xf32, #tpu.memory_space<vmem>>, vector<1x8x256xf32>
    tpu.vector_store %arg9[%c0_21, %c48, %c0_22], %52 {strides = array<i32>} : memref<1x72x256xf32, #tpu.memory_space<vmem>>, vector<1x8x256xf32>,
    %c240_i32 = arith.constant 240 : i32
    %54 = tpu.dynamic_rotate %11 by %c240_i32 dim 1 : vector<8x256xf32>, i32 -> vector<8x256xf32>
    %55 = vector.extract_strided_slice %12 {offsets = [7, 0], sizes = [1, 256], strides = [1, 1]} : vector<9x256xf32> to vector<1x256xf32>
    %56 = vector.broadcast %55 : vector<1x256xf32> to vector<8x256xf32>
    %57 = arith.mulf %54, %56 : vector<8x256xf32>
    %58 = vector.shape_cast %57 : vector<8x256xf32> to vector<1x8x256xf32>
    %c0_23 = arith.constant 0 : index
    %c56 = arith.constant 56 : index
    %c0_24 = arith.constant 0 : index
    %59 = vector.load %arg9[%c0_23, %c56, %c0_24] : memref<1x72x256xf32, #tpu.memory_space<vmem>>, vector<1x8x256xf32>
    tpu.vector_store %arg9[%c0_23, %c56, %c0_24], %58 {strides = array<i32>} : memref<1x72x256xf32, #tpu.memory_space<vmem>>, vector<1x8x256xf32>,
    %c239_i32 = arith.constant 239 : i32
    %60 = tpu.dynamic_rotate %11 by %c239_i32 dim 1 : vector<8x256xf32>, i32 -> vector<8x256xf32>
    %61 = vector.extract_strided_slice %12 {offsets = [8, 0], sizes = [1, 256], strides = [1, 1]} : vector<9x256xf32> to vector<1x256xf32>
    %62 = vector.broadcast %61 : vector<1x256xf32> to vector<8x256xf32>
    %63 = arith.mulf %60, %62 : vector<8x256xf32>
    %64 = vector.shape_cast %63 : vector<8x256xf32> to vector<1x8x256xf32>
    %c0_25 = arith.constant 0 : index
    %c64 = arith.constant 64 : index
    %c0_26 = arith.constant 0 : index
    %65 = vector.load %arg9[%c0_25, %c64, %c0_26] : memref<1x72x256xf32, #tpu.memory_space<vmem>>, vector<1x8x256xf32>
    tpu.vector_store %arg9[%c0_25, %c64, %c0_26], %64 {strides = array<i32>} : memref<1x72x256xf32, #tpu.memory_space<vmem>>, vector<1x8x256xf32>,
    %c0_27 = arith.constant 0 : index
    %c0_28 = arith.constant 0 : index
    %66 = vector.load %arg6[%c0_27, %c0_28] : memref<8x1xf32, #tpu.memory_space<vmem>>, vector<8x1xf32>
    %cst_29 = arith.constant 0.000000e+00 : f32
    %67 = vector.broadcast %cst_29 : f32 to vector<8x256xf32>
    %cst_30 = arith.constant 0.000000e+00 : f32
    %68 = vector.broadcast %cst_30 : f32 to vector<8x256xf32>
    %c0_31 = arith.constant 0 : index
    %c0_32 = arith.constant 0 : index
    %69 = vector.load %arg5[%c0_31, %c0_32] : memref<8x72xf32, #tpu.memory_space<vmem>>, vector<8x72xf32>
    %c0_33 = arith.constant 0 : index
    %c0_34 = arith.constant 0 : index
    %c0_35 = arith.constant 0 : index
    %70 = vector.load %arg9[%c0_33, %c0_34, %c0_35] : memref<1x72x256xf32, #tpu.memory_space<vmem>>, vector<1x72x256xf32>
    %71 = vector.shape_cast %70 : vector<1x72x256xf32> to vector<72x256xf32>
    %cst_36 = arith.constant dense<0.000000e+00> : vector<8x256xf32>
    %72 = tpu.matmul %69, %71, %cst_36 {dimension_numbers = #tpu.dot_dimension_numbers<[1], [0], [0], [1], [0, 0, 1, 1], [], []>} : vector<8x72xf32>, vector<72x256xf32>, vector<8x256xf32> -> vector<8x256xf32>
    %73 = vector.broadcast %66 : vector<8x1xf32> to vector<8x256xf32>
    %74 = arith.addf %72, %73 : vector<8x256xf32>
    %c0_37 = arith.constant 0 : index
    %c0_38 = arith.constant 0 : index
    %c0_39 = arith.constant 0 : index
    %75 = vector.load %arg7[%c0_37, %c0_38, %c0_39] : memref<1x8x256xf32, #tpu.memory_space<vmem>>, vector<1x8x256xf32>
    %76 = vector.shape_cast %75 : vector<1x8x256xf32> to vector<8x256xf32>
    %77 = vector.shape_cast %74 : vector<8x256xf32> to vector<1x8x256xf32>
    tpu.vector_store %arg7[%c0_37, %c0_38, %c0_39], %77 {strides = array<i32>} : memref<1x8x256xf32, #tpu.memory_space<vmem>>, vector<1x8x256xf32>,
    %78 = arith.addf %67, %74 : vector<8x256xf32>
    %79 = arith.mulf %74, %74 : vector<8x256xf32>
    %80 = arith.addf %68, %79 : vector<8x256xf32>
    %c0_40 = arith.constant 0 : index
    %c0_41 = arith.constant 0 : index
    %c0_42 = arith.constant 0 : index
    %81 = vector.load %arg8[%c0_40, %c0_41, %c0_42] : memref<1x16x256xf32, #tpu.memory_space<vmem>>, vector<1x8x256xf32>
    %82 = vector.shape_cast %81 : vector<1x8x256xf32> to vector<8x256xf32>
    %83 = vector.shape_cast %78 : vector<8x256xf32> to vector<1x8x256xf32>
    tpu.vector_store %arg8[%c0_40, %c0_41, %c0_42], %83 {strides = array<i32>} : memref<1x16x256xf32, #tpu.memory_space<vmem>>, vector<1x8x256xf32>,
    %c0_43 = arith.constant 0 : index
    %c8_44 = arith.constant 8 : index
    %c0_45 = arith.constant 0 : index
    %84 = vector.load %arg8[%c0_43, %c8_44, %c0_45] : memref<1x16x256xf32, #tpu.memory_space<vmem>>, vector<1x8x256xf32>
    %85 = vector.shape_cast %84 : vector<1x8x256xf32> to vector<8x256xf32>
    %86 = vector.shape_cast %80 : vector<8x256xf32> to vector<1x8x256xf32>
    tpu.vector_store %arg8[%c0_43, %c8_44, %c0_45], %86 {strides = array<i32>} : memref<1x16x256xf32, #tpu.memory_space<vmem>>, vector<1x8x256xf32>,
    return
  }
  func.func @transform_0(%arg0: i32) -> (i32, i32, i32) {
    %c0_i32 = arith.constant 0 : i32
    %c0_i32_0 = arith.constant 0 : i32
    %c0_i32_1 = arith.constant 0 : i32
    return %arg0, %c0_i32, %c0_i32_0 : i32, i32, i32
  }
  func.func @transform_1(%arg0: i32) -> (i32, i32) {
    %c0_i32 = arith.constant 0 : i32
    %c0_i32_0 = arith.constant 0 : i32
    %c0_i32_1 = arith.constant 0 : i32
    return %c0_i32, %c0_i32_0 : i32, i32
  }
  func.func @transform_2(%arg0: i32) -> (i32, i32) {
    %c0_i32 = arith.constant 0 : i32
    %c0_i32_0 = arith.constant 0 : i32
    %c0_i32_1 = arith.constant 0 : i32
    return %c0_i32, %c0_i32_0 : i32, i32
  }
  func.func @transform_3(%arg0: i32) -> (i32, i32) {
    %c0_i32 = arith.constant 0 : i32
    %c0_i32_0 = arith.constant 0 : i32
    %c0_i32_1 = arith.constant 0 : i32
    return %c0_i32, %c0_i32_0 : i32, i32
  }
  func.func @transform_4(%arg0: i32) -> (i32, i32) {
    %c0_i32 = arith.constant 0 : i32
    %c0_i32_0 = arith.constant 0 : i32
    %c0_i32_1 = arith.constant 0 : i32
    return %c0_i32, %c0_i32_0 : i32, i32
  }
  func.func @transform_5(%arg0: i32) -> (i32, i32) {
    %c0_i32 = arith.constant 0 : i32
    %c0_i32_0 = arith.constant 0 : i32
    %c0_i32_1 = arith.constant 0 : i32
    return %c0_i32, %c0_i32_0 : i32, i32
  }
  func.func @transform_6(%arg0: i32) -> (i32, i32, i32) {
    %c0_i32 = arith.constant 0 : i32
    %c0_i32_0 = arith.constant 0 : i32
    %c0_i32_1 = arith.constant 0 : i32
    return %arg0, %c0_i32, %c0_i32_0 : i32, i32, i32
  }
  func.func @transform_7(%arg0: i32) -> (i32, i32, i32) {
    %c0_i32 = arith.constant 0 : i32
    %c0_i32_0 = arith.constant 0 : i32
    %c0_i32_1 = arith.constant 0 : i32
    return %arg0, %c0_i32, %c0_i32_0 : i32, i32, i32
  }
}

</mosaic_0001>

<bundles_post_ra>
// kernel: cnn_layer.5
= control target key start
LH: loop header
LB: loop body
LE: loop exit
PB: predicated region body
PF: predicated region fallthrough
CT: control target
= control target key end

     0   :  { %s300_s12 = smov 0   ;;  %s323_s0 = inlined_call_operand.vmem [shape: f32[2,8,256], index: 0, kind: input, shape index: {}]   ;;  %s324_s1 = inlined_call_operand.vmem [shape: f32[8,1], index: 1, kind: input, shape index: {}]   ;;  %s325_s2 = inlined_call_operand.vmem [shape: f32[8,1], index: 2, kind: input, shape index: {}]   ;;  %s326_s3 = inlined_call_operand.vmem [shape: f32[2,8,256], index: 3, kind: output, shape index: {}]  }
   0x1 LB: > { %s248_s13 = sadd.s32 4294967295, %s277_s12   ;;  %p252_p0 = scmp.ge.s32.totalorder %s277_s12, 1  ;;  %s277_s12 = sphi %s300_s12, %s13_s12  }
   0x2   : > { %p137_p1 = scmp.lt.s32.totalorder %s277_s12, 3 }
   0x4   : > { %p138_p2 = pnand %p252_p0, %p137_p1 }
   0x5   : > { %v173_v0 = vld [vmem:[%s324_s1] sm:$0xff] (!%p138_p2)  ;;  %v279_v1 = vmov (!%p138_p2), 0   ;;  %p161_p3 = scmp.lt.s32.totalorder (!%p138_p2), %s248_s13, 1 }
   0x6   : > { %141 = sbr.rel (%p138_p2) target bundleno = 144 (0x90), region = 32  ;;  %270 = vset.pattern.permute.xlu0 (!%p138_p2), %v279_v1  ;;  %v181_v2 = vld [vmem:[%s325_s2] sm:$0xff] (!%p138_p2) }
   0x7   : > { %176 = vperm.xlu0 (!%p138_p2), %270, %v173_v0  }
   0xb   : > { %184 = vperm.xlu0 (!%p138_p2), %270, %v181_v2  }
   0xd   : > { %s328_s13 = smov (!%p161_p3, %s248_s13), 1 }
   0xe   : > { %s259_s18 = sshll.u32 %s328_s13, 4 }
   0xf   : > { %s165_s21 = scalar_lea.vmem %s323_s0, %s259_s18  ;;  %s170_s24 = scalar_lea.vmem %s326_s3, %s259_s18 }
  0x10   : > { %v171_v4 = vld [vmem:[%s165_s21] sm:$0xff]  ;;  %v172_v5 = vld [vmem:[%s165_s21 + $0x8] sm:$0xff] }
  0x86   : > { %v177_v3 = vpop.permute.xlu0 %176 }
  0x87   : > { %v179_v6 = vmul.f32 %v177_v3, %v171_v4  ;;  %v180_v7 = vmul.f32 %v177_v3, %v172_v5 }
  0x8a   : > { %v185_v8 = vpop.permute.xlu0 %184 }
  0x8b   : > { %v187_v9 = vadd.f32 %v185_v8, %v179_v6  ;;  %v188_v10 = vadd.f32 %v185_v8, %v180_v7 }
  0x8d   : > { %v189_v11 = vmax.f32 %v187_v9, 0.0  ;;  %v190_v12 = vmax.f32 %v188_v10, 0.0 }
  0x8f   : > { %191 = vst [vmem:[%s170_s24] sm:$0xff] %v189_v11  ;;  %192 = vst [vmem:[%s170_s24 + $0x8] sm:$0xff] %v190_v12 }
  0x90 PF: > { %s13_s12 = sadd.s32 1, %s277_s12  }
  0x91   : > { %p10_p4 = scmp.ge.s32.totalorder %s13_s12, 4  }
  0x93   :  { %12 = sbr.rel (!%p10_p4) target bundleno = 1 (0x1), region = 62 }

// kernel: cnn_layer.3
= control target key start
LH: loop header
LB: loop body
LE: loop exit
PB: predicated region body
PF: predicated region fallthrough
CT: control target
= control target key end

     0   :  { %s802_s24 = smov 0   ;;  %s903_s0 = inlined_call_operand.vmem [shape: f32[2,4,256], index: 0, kind: input, shape index: {}]   ;;  %s904_s1 = inlined_call_operand.vmem [shape: f32[9,256], index: 1, kind: input, shape index: {}]   ;;  %s905_s2 = inlined_call_operand.vmem [shape: f32[4,1], index: 2, kind: input, shape index: {}]   ;;  %s906_s3 = inlined_call_operand.vmem [shape: f32[4,1], index: 3, kind: input, shape index: {}]   ;;  %s907_s4 = inlined_call_operand.vmem [shape: f32[8,36], index: 4, kind: input, shape index: {}]   ;;  %s908_s5 = inlined_call_operand.vmem [shape: f32[8,1], index: 5, kind: input, shape index: {}]   ;;  %s909_s6 = inlined_call_operand.vmem [shape: f32[2,8,256], index: 6, kind: output, shape index: {0}]   ;;  %s910_s7 = inlined_call_operand.vmem [shape: f32[2,16,256], index: 7, kind: output, shape index: {1}]  }
   0x1 LB: > { %s695_s2 = sadd.s32 4294967295, %s750_s24   ;;  %p699_p0 = scmp.ge.s32.totalorder %s750_s24, 1  ;;  %s750_s24 = sphi %s802_s24, %s18_s24  }
   0x2   : > { %p240_p1 = scmp.lt.s32.totalorder %s750_s24, 3 }
   0x4   : > { %p241_p2 = pnand %p699_p0, %p240_p1 }
   0x5   : > { %p277_p3 = scmp.lt.s32.totalorder (!%p241_p2), %s695_s2, 1  ;;  %v304_v0 = vlaneseq (!%p241_p2)  ;;  %v293_v2 = vld [vmem:[%s904_s1] sm:$0xff] (!%p241_p2)  ;;  %v294_v3 = vld [vmem:[%s904_s1 + $0x8] sm:$0xff] (!%p241_p2)  ;;  %s752_s9 = smov (!%p241_p2), 1   ;;  %v760_v33 = vmov (!%p241_p2), 0.0   ;;  %v761_v35 = vmov (!%p241_p2), 0  }
   0x6   : > { %244 = sbr.rel (%p241_p2) target bundleno = 393 (0x189), region = 44  ;;  %s753_s10 = smov (!%p241_p2), 16   ;;  %588 = vmatprep.mubr.f32.mxu0 (!%p241_p2), %v760_v33  ;;  %v496_v34 = vld [vmem:[%s908_s5] sm:$0xff] (!%p241_p2)  ;;  %742 = vset.pattern.permute.xlu0 (!%p241_p2), %v761_v35  ;;  %vm517_vm8 = vcmask (!%p241_p2), 1043456   ;;  %vm513_vm9 = vcmask (!%p241_p2), 293888  }
   0x7   : > { %v310_v1 = vshrl.u32 (!%p241_p2), %v304_v0, 7  ;;  %s754_s11 = smov (!%p241_p2), 17   ;;  %s755_s12 = smov (!%p241_p2), 15   ;;  %v855_v36 = vand.u32 (!%p241_p2), 127, %v304_v0 }
   0x8   : > { %s756_s13 = smov (!%p241_p2), 127   ;;  %s757_s14 = smov (!%p241_p2), 112  }
   0x9   : > { %v374_v4 = vsub.s32 (!%p241_p2), 3, %v310_v1  ;;  %v392_v5 = vsub.s32 (!%p241_p2), 4, %v310_v1  ;;  %v311_v6 = vsub.s32 (!%p241_p2), 0, %v310_v1  ;;  %v330_v7 = vsub.s32 (!%p241_p2), 1, %v310_v1  ;;  %s758_s15 = smov (!%p241_p2), 113   ;;  %s759_s16 = smov (!%p241_p2), 111  }
   0xa   : > { %v355_v16 = vsub.s32 (!%p241_p2), 2, %v310_v1  ;;  %v417_v20 = vsub.s32 (!%p241_p2), 5, %v310_v1  ;;  %v461_v25 = vsub.s32 (!%p241_p2), 7, %v310_v1  ;;  %v442_v30 = vsub.s32 (!%p241_p2), 6, %v310_v1 }
   0xb   : > { %v823_v9 = vrot.slane (!%p241_p2), %v293_v2, %v374_v4  ;;  %v825_v10 = vrot.slane (!%p241_p2), %v294_v3, %v374_v4  ;;  %v393_v11 = vrot.slane (!%p241_p2), %v293_v2, %v392_v5  ;;  %v397_v12 = vrot.slane (!%p241_p2), %v294_v3, %v392_v5 }
   0xc   : > { %v827_v14 = vrot.slane (!%p241_p2), %v293_v2, %v311_v6  ;;  %v829_v15 = vrot.slane (!%p241_p2), %v294_v3, %v311_v6  ;;  %v831_v18 = vrot.slane (!%p241_p2), %v293_v2, %v330_v7  ;;  %v833_v19 = vrot.slane (!%p241_p2), %v294_v3, %v330_v7 }
   0xd   : > { %s912_s2 = smov (!%p277_p3, %s695_s2), 1  ;;  %v400_v17 = vcombine.low %v393_v11, %v397_v12  ;;  %v835_v21 = vrot.slane %v293_v2, %v355_v16  ;;  %v837_v22 = vrot.slane %v294_v3, %v355_v16  ;;  %v839_v23 = vrot.slane %v293_v2, %v417_v20 }
   0xe   : > { %s713_s28 = sshll.u32 %s912_s2, 3  ;;  %v841_v24 = vrot.slane %v294_v3, %v417_v20  ;;  %v843_v27 = vrot.slane %v293_v2, %v461_v25  ;;  %v845_v28 = vrot.slane %v294_v3, %v461_v25  ;;  %v847_v31 = vrot.slane %v293_v2, %v442_v30  ;;  %s714_s25 = sshll.u32 %s912_s2, 4 }
   0xf   : > { %s281_s8 = scalar_lea.vmem %s903_s0, %s713_s28  ;;  %v849_v32 = vrot.slane %v294_v3, %v442_v30  ;;  %vm369_vm0 = vcmp.lt.s32.totalorder %v855_v36, 1  ;;  %vm306_vm1 = vcmp.lt.s32.totalorder %v855_v36, 17  ;;  %vm325_vm2 = vcmp.lt.s32.totalorder %v855_v36, 16  ;;  %v707_v30 = vld [vmem:[%s904_s1 + $0x18] ss:$0 sm:$0xff]  ;;  %s715_s26 = sshll.u32 %s912_s2, 5 }
  0x10   : > { %v292_v8 = vld [vmem:[%s281_s8] sm:$0xff]  ;;  %vm350_vm3 = vcmp.lt.s32.totalorder %v855_v36, 15  ;;  %vm412_vm4 = vcmp.lt.s32.totalorder %v855_v36, 127  ;;  %vm456_vm5 = vcmp.lt.s32.totalorder %v855_v36, 112  ;;  %vm437_vm6 = vcmp.lt.s32.totalorder %v855_v36, 113  ;;  %s286_s29 = scalar_lea.vmem %s909_s6, %s714_s25 }
  0x11   : > { %365 = vrot.lane.b32.xlu1 %v292_v8, %s752_s9  ;;  %321 = vrot.lane.b32.xlu0 %v292_v8, %s753_s10  ;;  %v298_v13 = vcombine.high %v292_v8, %v292_v8  ;;  %v402_v26 = vmul.f32 %v400_v17, %v292_v8  ;;  %vm481_vm7 = vcmp.lt.s32.totalorder %v855_v36, 111 }
  0x13   : > { %v404_v29 = vcombine.high %v402_v26, %v402_v26  ;;  %406 = vst [vmem:[#allocation2 + $0x20] sm:$0xf] %v402_v26 }
  0x15   : > { %300 = vrot.lane.b32.xlu0 %v292_v8, %s754_s11  ;;  %367 = vrot.lane.b32.xlu1 %v298_v13, %s752_s9  ;;  %407 = vst [vmem:[#allocation2 + $0x28] sm:$0xf] %v404_v29  ;;  %v706_v29 = vld [vmem:[%s904_s1 + $0x10] ss:$0 sm:$0xff]  ;;  %s291_s9 = scalar_lea.vmem %s910_s7, %s715_s26 }
  0x19   : > { %302 = vrot.lane.b32.xlu1 %v298_v13, %s754_s11  ;;  %323 = vrot.lane.b32.xlu0 %v298_v13, %s753_s10 }
  0x1d   : > { %348 = vrot.lane.b32.xlu1 %v298_v13, %s755_s12  ;;  %346 = vrot.lane.b32.xlu0 %v292_v8, %s755_s12 }
  0x21   : > { %410 = vrot.lane.b32.xlu1 %v298_v13, %s756_s13  ;;  %408 = vrot.lane.b32.xlu0 %v292_v8, %s756_s13 }
  0x25   : > { %454 = vrot.lane.b32.xlu1 %v298_v13, %s757_s14  ;;  %452 = vrot.lane.b32.xlu0 %v292_v8, %s757_s14 }
  0x29   : > { %435 = vrot.lane.b32.xlu1 %v298_v13, %s758_s15  ;;  %433 = vrot.lane.b32.xlu0 %v292_v8, %s758_s15 }
  0x2d   : > { %479 = vrot.lane.b32.xlu1 %v298_v13, %s759_s16  ;;  %477 = vrot.lane.b32.xlu0 %v292_v8, %s759_s16 }
  0x31   : > { %510 = vperm.xlu0 %742, %v496_v34  }
  0x83   : > { %v366_v37 = vpop.permute.xlu1 %365  ;;  %v322_v38 = vpop.permute.xlu0 %321 }
  0x87   : > { %v301_v39 = vpop.permute.xlu0 %300  ;;  %v368_v40 = vpop.permute.xlu1 %367 }
  0x88   : > { %v370_v41 = vsel %vm369_vm0, %v366_v37, %v368_v40  ;;  %v371_v42 = vsel %vm369_vm0, %v368_v40, %v366_v37 }
  0x89   : > { %v380_v43 = vmul.f32 %v823_v9, %v371_v42  ;;  %v381_v44 = vmul.f32 %v825_v10, %v370_v41 }
  0x8b   : > { %v384_v45 = vrot.slane %v380_v43, 4  ;;  %v385_v46 = vrot.slane %v381_v44, 4  ;;  %v303_v47 = vpop.permute.xlu1 %302  ;;  %v324_v48 = vpop.permute.xlu0 %323 }
  0x8c   : > { %v307_v49 = vsel %vm306_vm1, %v301_v39, %v303_v47  ;;  %v308_v50 = vsel %vm306_vm1, %v303_v47, %v301_v39  ;;  %v326_v51 = vsel %vm325_vm2, %v322_v38, %v324_v48  ;;  %v327_v52 = vsel %vm325_vm2, %v324_v48, %v322_v38 }
  0x8d   : > { %388 = vst [vmem:[#allocation2 + $0x10] sm:$0xf0] %v384_v45  ;;  %389 = vst [vmem:[#allocation2 + $0x18] sm:$0xf0] %v385_v46  ;;  %v317_v53 = vmul.f32 %v827_v14, %v308_v50  ;;  %v318_v54 = vmul.f32 %v829_v15, %v307_v49  ;;  %v336_v55 = vmul.f32 %v831_v18, %v327_v52  ;;  %v497_v45 = vld [vmem:[%s907_s4] sm:$0xff] }
  0x8e   : > { %v337_v56 = vmul.f32 %v833_v19, %v326_v51 }
  0x8f   : > { %319 = vst [vmem:[#allocation2] sm:$0xf] %v317_v53  ;;  %320 = vst [vmem:[#allocation2 + $0x8] sm:$0xf] %v318_v54  ;;  %v340_v57 = vrot.slane %v336_v55, 4  ;;  %v349_v59 = vpop.permute.xlu1 %348  ;;  %v347_v60 = vpop.permute.xlu0 %346 }
  0x90   : > { %v341_v58 = vrot.slane %v337_v56, 4  ;;  %v351_v61 = vsel %vm350_vm3, %v347_v60, %v349_v59  ;;  %v352_v62 = vsel %vm350_vm3, %v349_v59, %v347_v60 }
  0x91   : > { %344 = vst [vmem:[#allocation2] sm:$0xf0] %v340_v57  ;;  %v361_v63 = vmul.f32 %v835_v21, %v352_v62  ;;  %v362_v0 = vmul.f32 %v837_v22, %v351_v61 }
  0x92   : > { %345 = vst [vmem:[#allocation2 + $0x8] sm:$0xf0] %v341_v58 }
  0x93   : > { %363 = vst [vmem:[#allocation2 + $0x10] sm:$0xf] %v361_v63  ;;  %364 = vst [vmem:[#allocation2 + $0x18] sm:$0xf] %v362_v0  ;;  %v411_v1 = vpop.permute.xlu1 %410  ;;  %v409_v2 = vpop.permute.xlu0 %408 }
  0x94   : > { %v413_v3 = vsel %vm412_vm4, %v409_v2, %v411_v1  ;;  %v414_v4 = vsel %vm412_vm4, %v411_v1, %v409_v2 }
  0x95   : > { %v423_v5 = vmul.f32 %v839_v23, %v413_v3  ;;  %v424_v6 = vmul.f32 %v841_v24, %v414_v4 }
  0x97   : > { %v427_v7 = vrot.slane %v423_v5, 4  ;;  %v428_v8 = vrot.slane %v424_v6, 4  ;;  %v455_v9 = vpop.permute.xlu1 %454  ;;  %v453_v10 = vpop.permute.xlu0 %452 }
  0x98   : > { %v457_v11 = vsel %vm456_vm5, %v453_v10, %v455_v9  ;;  %v458_v12 = vsel %vm456_vm5, %v455_v9, %v453_v10  ;;  %v498_v17 = vld [vmem:[#allocation2] sm:$0xff] }
  0x99   : > { %431 = vst [vmem:[#allocation2 + $0x20] sm:$0xf0] %v427_v7  ;;  %432 = vst [vmem:[#allocation2 + $0x28] sm:$0xf0] %v428_v8  ;;  %v467_v13 = vmul.f32 %v843_v27, %v457_v11  ;;  %v468_v14 = vmul.f32 %v845_v28, %v458_v12  ;;  %v499_v15 = vld [vmem:[#allocation2 + $0x8] sm:$0xff] }
  0x9a   : > { %v501_v16 = vld [vmem:[#allocation2 + $0x18] sm:$0xff]  ;;  %v500_v18 = vld [vmem:[#allocation2 + $0x10] sm:$0xff] }
  0x9b   : > { %v471_v19 = vrot.slane %v467_v13, 4  ;;  %v472_v20 = vrot.slane %v468_v14, 4  ;;  %v436_v21 = vpop.permute.xlu1 %435  ;;  %v434_v22 = vpop.permute.xlu0 %433  ;;  %v716_v23 = vpack.c.bf16 %v501_v16, %v499_v15  ;;  %v718_v24 = vpack.c.bf16 %v500_v18, %v498_v17 }
  0x9c   : > { %v438_v25 = vsel %vm437_vm6, %v434_v22, %v436_v21  ;;  %v439_v26 = vsel %vm437_vm6, %v436_v21, %v434_v22 }
  0x9d   : > { %475 = vst [vmem:[#allocation2 + $0x30] sm:$0xf0] %v471_v19  ;;  %476 = vst [vmem:[#allocation2 + $0x38] sm:$0xf0] %v472_v20  ;;  %v448_v27 = vmul.f32 %v847_v31, %v438_v25  ;;  %v449_v28 = vmul.f32 %v849_v32, %v439_v26  ;;  %717 = vmatprep.subr.bf16.mxu0 %v716_v23 }
  0x9e   : > { %719 = vmatpush1.bf16.msra.mxu0 %v718_v24 }
  0x9f   : > { %450 = vst [vmem:[#allocation2 + $0x30] sm:$0xf] %v448_v27  ;;  %451 = vst [vmem:[#allocation2 + $0x38] sm:$0xf] %v449_v28  ;;  %v480_v33 = vpop.permute.xlu1 %479  ;;  %v478_v34 = vpop.permute.xlu0 %477 }
  0xa0   : > { %v482_v35 = vsel %vm481_vm7, %v478_v34, %v480_v33  ;;  %v483_v31 = vsel %vm481_vm7, %v480_v33, %v478_v34  ;;  %v503_v36 = vld [vmem:[#allocation2 + $0x28] sm:$0xff]  ;;  %v502_v39 = vld [vmem:[#allocation2 + $0x20] sm:$0xff] }
  0xa1   : > { %v492_v37 = vmul.f32 %v706_v29, %v482_v35  ;;  %v493_v32 = vmul.f32 %v707_v30, %v483_v31 }
  0xa3   : > { %494 = vst [vmem:[#allocation2 + $0x40] sm:$0xf] %v492_v37  ;;  %495 = vst [vmem:[#allocation2 + $0x48] sm:$0xf] %v493_v32 }
  0xa6   : > { %v505_v38 = vld [vmem:[#allocation2 + $0x38] sm:$0xff]  ;;  %v504_v40 = vld [vmem:[#allocation2 + $0x30] sm:$0xff] }
  0xa7   : > { %v720_v41 = vpack.c.bf16 %v505_v38, %v503_v36  ;;  %v722_v42 = vpack.c.bf16 %v504_v40, %v502_v39 }
  0xa9   : > { %721 = vmatprep.subr.bf16.mxu0 %v720_v41 }
  0xaa   : > { %723 = vmatpush1.bf16.msra.mxu0 %v722_v42  ;;  %v507_v43 = vld [vmem:[#allocation2 + $0x48] sm:$0xf]  ;;  %v506_v44 = vld [vmem:[#allocation2 + $0x40] sm:$0xf] }
  0xab   : > { %708 = vmatprep.subr.msk.mxu0 %vm517_vm8, %v507_v43 }
  0xae   : > { %709 = vmatpush1.msk.msra.mxu0 %vm517_vm8, %v506_v44 }
  0xaf   : > { %710 = vmatmul.mubr.msk.f32.vlgmr.msra.gmra.mrb[0].mxu0 %vm513_vm9, %v497_v45 }
  0xb0   : > { %v511_v46 = vpop.permute.xlu0 %510 }
 0x182   : > { %v590_v47 = vpop.f32.mrb[0].mxu0 }
 0x183   : > { %v591_v48 = vadd.f32 %v590_v47, %v511_v46  ;;  %v592_v49 = vpop.f32.mrb[1].mxu0 }
 0x184   : > { %v593_v50 = vadd.f32 %v592_v49, %v511_v46 }
 0x185   : > { %595 = vst [vmem:[%s286_s29] sm:$0xff] %v591_v48  ;;  %v599_v51 = vmul.f32 %v591_v48, %v591_v48  ;;  %603 = vst [vmem:[%s291_s9] sm:$0xff] %v591_v48 }
 0x186   : > { %596 = vst [vmem:[%s286_s29 + $0x8] sm:$0xff] %v593_v50  ;;  %v600_v52 = vmul.f32 %v593_v50, %v593_v50  ;;  %604 = vst [vmem:[%s291_s9 + $0x8] sm:$0xff] %v593_v50 }
 0x187   : > { %605 = vst [vmem:[%s291_s9 + $0x10] sm:$0xff] %v599_v51 }
 0x188   : > { %606 = vst [vmem:[%s291_s9 + $0x18] sm:$0xff] %v600_v52 }
 0x189 PF: > { %s18_s24 = sadd.s32 1, %s750_s24  }
 0x18a   : > { %p15_p4 = scmp.ge.s32.totalorder %s18_s24, 4  }
 0x18c   :  { %17 = sbr.rel (!%p15_p4) target bundleno = 1 (0x1), region = 86 }

// kernel: cnn_layer.4
= control target key start
LH: loop header
LB: loop body
LE: loop exit
PB: predicated region body
PF: predicated region fallthrough
CT: control target
= control target key end

     0   :  { %s794_s24 = smov 0   ;;  %s912_s0 = inlined_call_operand.vmem [shape: f32[2,8,256], index: 0, kind: input, shape index: {}]   ;;  %s913_s1 = inlined_call_operand.vmem [shape: f32[9,256], index: 1, kind: input, shape index: {}]   ;;  %s914_s2 = inlined_call_operand.vmem [shape: f32[8,1], index: 2, kind: input, shape index: {}]   ;;  %s915_s3 = inlined_call_operand.vmem [shape: f32[8,1], index: 3, kind: input, shape index: {}]   ;;  %s916_s4 = inlined_call_operand.vmem [shape: f32[8,72], index: 4, kind: input, shape index: {}]   ;;  %s917_s5 = inlined_call_operand.vmem [shape: f32[8,1], index: 5, kind: input, shape index: {}]   ;;  %s918_s6 = inlined_call_operand.vmem [shape: f32[2,8,256], index: 6, kind: output, shape index: {0}]   ;;  %s919_s7 = inlined_call_operand.vmem [shape: f32[2,16,256], index: 7, kind: output, shape index: {1}]  }
   0x1 LB: > { %s682_s25 = sadd.s32 4294967295, %s742_s24   ;;  %p686_p0 = scmp.ge.s32.totalorder %s742_s24, 1  ;;  %s742_s24 = sphi %s794_s24, %s18_s24  }
   0x2   : > { %p240_p1 = scmp.lt.s32.totalorder %s742_s24, 3 }
   0x4   : > { %p241_p2 = pnand %p686_p0, %p240_p1 }
   0x5   : > { %v294_v0 = vld [vmem:[%s914_s2] sm:$0xff] (!%p241_p2)  ;;  %v744_v1 = vmov (!%p241_p2), 0   ;;  %p277_p3 = scmp.lt.s32.totalorder (!%p241_p2), %s682_s25, 1  ;;  %s745_s11 = smov (!%p241_p2), 16   ;;  %v753_v14 = vmov (!%p241_p2), 0.0   ;;  %v320_v15 = vlaneseq (!%p241_p2)  ;;  %v855_v26 = vld [vmem:[%s913_s1 + $0x8] sm:$0xff] (!%p241_p2) }
   0x6   : > { %244 = sbr.rel (%p241_p2) target bundleno = 515 (0x203), region = 44  ;;  %735 = vset.pattern.permute.xlu0 (!%p241_p2), %v744_v1  ;;  %v302_v2 = vld [vmem:[%s915_s3] sm:$0xff] (!%p241_p2)  ;;  %s746_s12 = smov (!%p241_p2), 17   ;;  %575 = vmatprep.mubr.f32.mxu0 (!%p241_p2), %v753_v14  ;;  %vm507_vm8 = vcmask (!%p241_p2), 588800  }
   0x7   : > { %297 = vperm.xlu0 (!%p241_p2), %735, %v294_v0   ;;  %s747_s13 = smov (!%p241_p2), 15   ;;  %s748_s14 = smov (!%p241_p2), 1   ;;  %v482_v13 = vld [vmem:[%s917_s5] sm:$0xff] (!%p241_p2)  ;;  %v839_v16 = vshrl.u32 (!%p241_p2), %v320_v15, 7  ;;  %v841_v19 = vand.u32 (!%p241_p2), 127, %v320_v15 }
   0x8   : > { %s749_s15 = smov (!%p241_p2), 127   ;;  %s750_s16 = smov (!%p241_p2), 113   ;;  %v848_v23 = vld [vmem:[%s913_s1] sm:$0xff] (!%p241_p2) }
   0x9   : > { %s751_s17 = smov (!%p241_p2), 112   ;;  %s752_s18 = smov (!%p241_p2), 111   ;;  %v327_v20 = vsub.s32 (!%p241_p2), 0, %v839_v16  ;;  %v346_v21 = vsub.s32 (!%p241_p2), 1, %v839_v16  ;;  %vm322_vm0 = vcmp.lt.s32.totalorder (!%p241_p2), %v841_v19, 17  ;;  %vm341_vm1 = vcmp.lt.s32.totalorder (!%p241_p2), %v841_v19, 16 }
   0xa   : > { %v365_v36 = vsub.s32 (!%p241_p2), 2, %v839_v16  ;;  %v384_v37 = vsub.s32 (!%p241_p2), 3, %v839_v16  ;;  %vm360_vm2 = vcmp.lt.s32.totalorder (!%p241_p2), %v841_v19, 15  ;;  %v396_v45 = vsub.s32 (!%p241_p2), 4, %v839_v16 }
   0xb   : > { %305 = vperm.xlu0 (!%p241_p2), %735, %v302_v2   ;;  %v328_v25 = vrot.slane (!%p241_p2), %v848_v23, %v327_v20  ;;  %v347_v27 = vrot.slane (!%p241_p2), %v848_v23, %v346_v21  ;;  %v332_v28 = vrot.slane (!%p241_p2), %v855_v26, %v327_v20  ;;  %v351_v29 = vrot.slane (!%p241_p2), %v855_v26, %v346_v21 }
   0xc   : > { %v366_v46 = vrot.slane (!%p241_p2), %v848_v23, %v365_v36  ;;  %v415_v47 = vsub.s32 (!%p241_p2), 5, %v839_v16  ;;  %v370_v49 = vrot.slane (!%p241_p2), %v855_v26, %v365_v36  ;;  %vm379_vm3 = vcmp.lt.s32.totalorder (!%p241_p2), %v841_v19, 1 }
   0xd   : > { %s921_s25 = smov (!%p277_p3, %s682_s25), 1  ;;  %v385_v50 = vrot.slane %v848_v23, %v384_v37  ;;  %v389_v51 = vrot.slane %v855_v26, %v384_v37  ;;  %vm410_vm4 = vcmp.lt.s32.totalorder %v841_v19, 127  ;;  %v401_v55 = vrot.slane %v855_v26, %v396_v45  ;;  %v693_v37 = vld [vmem:[%s913_s1 + $0x10] ss:$0 sm:$0xff] }
   0xe   : > { %s698_s30 = sshll.u32 %s921_s25, 4  ;;  %v397_v56 = vrot.slane %v848_v23, %v396_v45  ;;  %v416_v59 = vrot.slane %v848_v23, %v415_v47  ;;  %v420_v60 = vrot.slane %v855_v26, %v415_v47  ;;  %v453_v14 = vsub.s32 7, %v839_v16 }
   0xf   : > { %s281_s10 = scalar_lea.vmem %s912_s0, %s698_s30  ;;  %vm429_vm5 = vcmp.lt.s32.totalorder %v841_v19, 113  ;;  %vm448_vm6 = vcmp.lt.s32.totalorder %v841_v19, 112  ;;  %vm467_vm7 = vcmp.lt.s32.totalorder %v841_v19, 111 }
  0x10   : > { %v292_v4 = vld [vmem:[%s281_s10] sm:$0xff]  ;;  %v293_v5 = vld [vmem:[%s281_s10 + $0x8] sm:$0xff] }
  0x86   : > { %v298_v3 = vpop.permute.xlu0 %297 }
  0x87   : > { %v300_v6 = vmul.f32 %v298_v3, %v292_v4  ;;  %v301_v8 = vmul.f32 %v298_v3, %v293_v5 }
  0x8a   : > { %v306_v7 = vpop.permute.xlu0 %305 }
  0x8b   : > { %v308_v9 = vadd.f32 %v306_v7, %v300_v6  ;;  %v309_v10 = vadd.f32 %v306_v7, %v301_v8  ;;  %v434_v7 = vsub.s32 6, %v839_v16 }
  0x8d   : > { %v816_v11 = vmax.f32 %v308_v9, 0.0  ;;  %v820_v12 = vmax.f32 %v309_v10, 0.0  ;;  %v435_v20 = vrot.slane %v848_v23, %v434_v7 }
  0x8f   : > { %337 = vrot.lane.b32.xlu0 %v816_v11, %s745_s11  ;;  %316 = vrot.lane.b32.xlu1 %v816_v11, %s746_s12  ;;  %v403_v8 = vmul.f32 %v401_v55, %v820_v12 }
  0x93   : > { %356 = vrot.lane.b32.xlu0 %v816_v11, %s747_s13  ;;  %318 = vrot.lane.b32.xlu1 %v820_v12, %s746_s12 }
  0x97   : > { %375 = vrot.lane.b32.xlu0 %v816_v11, %s748_s14  ;;  %339 = vrot.lane.b32.xlu1 %v820_v12, %s745_s11  ;;  %s700_s11 = sshll.u32 %s921_s25, 5 }
  0x9b   : > { %406 = vrot.lane.b32.xlu0 %v816_v11, %s749_s15  ;;  %358 = vrot.lane.b32.xlu1 %v820_v12, %s747_s13 }
  0x9f   : > { %425 = vrot.lane.b32.xlu0 %v816_v11, %s750_s16  ;;  %377 = vrot.lane.b32.xlu1 %v820_v12, %s748_s14  ;;  %s286_s14 = scalar_lea.vmem %s918_s6, %s698_s30 }
  0xa3   : > { %444 = vrot.lane.b32.xlu0 %v816_v11, %s751_s17  ;;  %408 = vrot.lane.b32.xlu1 %v820_v12, %s749_s15 }
  0xa7   : > { %463 = vrot.lane.b32.xlu0 %v816_v11, %s752_s18  ;;  %427 = vrot.lane.b32.xlu1 %v820_v12, %s750_s16 }
  0xab   : > { %504 = vperm.xlu0 %735, %v482_v13   ;;  %446 = vrot.lane.b32.xlu1 %v820_v12, %s751_s17  ;;  %v402_v13 = vmul.f32 %v397_v56, %v816_v11  ;;  %v458_v11 = vrot.slane %v855_v26, %v453_v14  ;;  %s291_s17 = scalar_lea.vmem %s919_s7, %s700_s11 }
  0xaf   : > { %465 = vrot.lane.b32.xlu1 %v820_v12, %s752_s18  ;;  %v454_v12 = vrot.slane %v848_v23, %v453_v14 }
 0x101   : > { %v338_v17 = vpop.permute.xlu0 %337  ;;  %v317_v18 = vpop.permute.xlu1 %316 }
 0x105   : > { %v357_v22 = vpop.permute.xlu0 %356  ;;  %v319_v24 = vpop.permute.xlu1 %318 }
 0x106   : > { %v323_v30 = vsel %vm322_vm0, %v317_v18, %v319_v24  ;;  %v324_v31 = vsel %vm322_vm0, %v319_v24, %v317_v18 }
 0x107   : > { %v333_v38 = vmul.f32 %v328_v25, %v324_v31  ;;  %v334_v40 = vmul.f32 %v332_v28, %v323_v30 }
 0x109   : > { %v376_v32 = vpop.permute.xlu0 %375  ;;  %v340_v33 = vpop.permute.xlu1 %339 }
 0x10a   : > { %v342_v34 = vsel %vm341_vm1, %v338_v17, %v340_v33  ;;  %v343_v35 = vsel %vm341_vm1, %v340_v33, %v338_v17  ;;  %v694_v33 = vld [vmem:[%s913_s1 + $0x18] ss:$0 sm:$0xff] }
 0x10b   : > { %v352_v39 = vmul.f32 %v347_v27, %v343_v35  ;;  %v353_v41 = vmul.f32 %v351_v29, %v342_v34 }
 0x10d   : > { %v359_v42 = vpop.permute.xlu1 %358  ;;  %v701_v43 = vpack.c.bf16 %v353_v41, %v334_v40  ;;  %v703_v44 = vpack.c.bf16 %v352_v39, %v333_v38  ;;  %v407_v48 = vpop.permute.xlu0 %406  ;;  %v483_v40 = vld [vmem:[%s916_s4] sm:$0xff] }
 0x10e   : > { %v361_v52 = vsel %vm360_vm2, %v357_v22, %v359_v42  ;;  %v362_v53 = vsel %vm360_vm2, %v359_v42, %v357_v22  ;;  %v439_v22 = vrot.slane %v855_v26, %v434_v7 }
 0x10f   : > { %702 = vmatprep.subr.bf16.mxu0 %v701_v43  ;;  %v371_v61 = vmul.f32 %v366_v46, %v362_v53  ;;  %v372_v62 = vmul.f32 %v370_v49, %v361_v52 }
 0x110   : > { %704 = vmatpush1.bf16.msra.mxu0 %v703_v44 }
 0x111   : > { %v378_v54 = vpop.permute.xlu1 %377  ;;  %v426_v1 = vpop.permute.xlu0 %425 }
 0x112   : > { %v380_v57 = vsel %vm379_vm3, %v376_v32, %v378_v54  ;;  %v381_v58 = vsel %vm379_vm3, %v378_v54, %v376_v32 }
 0x113   : > { %v390_v63 = vmul.f32 %v385_v50, %v381_v58  ;;  %v391_v0 = vmul.f32 %v389_v51, %v380_v57 }
 0x115   : > { %v409_v2 = vpop.permute.xlu1 %408  ;;  %v705_v3 = vpack.c.bf16 %v391_v0, %v372_v62  ;;  %v707_v4 = vpack.c.bf16 %v390_v63, %v371_v61  ;;  %v445_v21 = vpop.permute.xlu0 %444 }
 0x116   : > { %v411_v5 = vsel %vm410_vm4, %v407_v48, %v409_v2  ;;  %v412_v6 = vsel %vm410_vm4, %v409_v2, %v407_v48 }
 0x117   : > { %v421_v9 = vmul.f32 %v416_v59, %v411_v5  ;;  %v422_v10 = vmul.f32 %v420_v60, %v412_v6  ;;  %706 = vmatprep.subr.bf16.mxu0 %v705_v3 }
 0x118   : > { %708 = vmatpush1.bf16.msra.mxu0 %v707_v4 }
 0x119   : > { %v428_v15 = vpop.permute.xlu1 %427  ;;  %v709_v17 = vpack.c.bf16 %v422_v10, %v403_v8  ;;  %v711_v18 = vpack.c.bf16 %v421_v9, %v402_v13  ;;  %v464_v34 = vpop.permute.xlu0 %463 }
 0x11a   : > { %v430_v24 = vsel %vm429_vm5, %v426_v1, %v428_v15  ;;  %v431_v16 = vsel %vm429_vm5, %v428_v15, %v426_v1 }
 0x11b   : > { %710 = vmatprep.subr.bf16.mxu0 %v709_v17  ;;  %v440_v29 = vmul.f32 %v435_v20, %v430_v24  ;;  %v441_v30 = vmul.f32 %v439_v22, %v431_v16 }
 0x11c   : > { %712 = vmatpush1.bf16.msra.mxu0 %v711_v18 }
 0x11d   : > { %v447_v25 = vpop.permute.xlu1 %446 }
 0x11e   : > { %v449_v27 = vsel %vm448_vm6, %v445_v21, %v447_v25  ;;  %v450_v28 = vsel %vm448_vm6, %v447_v25, %v445_v21 }
 0x11f   : > { %v459_v31 = vmul.f32 %v454_v12, %v449_v27  ;;  %v460_v32 = vmul.f32 %v458_v11, %v450_v28 }
 0x121   : > { %v466_v23 = vpop.permute.xlu1 %465  ;;  %v713_v26 = vpack.c.bf16 %v460_v32, %v441_v30  ;;  %v715_v35 = vpack.c.bf16 %v459_v31, %v440_v29 }
 0x122   : > { %v469_v36 = vsel %vm467_vm7, %v466_v23, %v464_v34  ;;  %v468_v19 = vsel %vm467_vm7, %v464_v34, %v466_v23 }
 0x123   : > { %v479_v38 = vmul.f32 %v694_v33, %v469_v36  ;;  %714 = vmatprep.subr.bf16.mxu0 %v713_v26  ;;  %v478_v39 = vmul.f32 %v693_v37, %v468_v19 }
 0x124   : > { %716 = vmatpush1.bf16.msra.mxu0 %v715_v35 }
 0x125   : > { %527 = vmatprep.subr.mxu0 %v479_v38 }
 0x128   : > { %528 = vmatpush1.msra.mxu0 %v478_v39 }
 0x129   : > { %695 = vmatmul.mubr.msk.f32.vlgmr.msra.gmra.mrb[0].mxu0 %vm507_vm8, %v483_v40 }
 0x12a   : > { %v505_v41 = vpop.permute.xlu0 %504 }
 0x1fc   : > { %v577_v42 = vpop.f32.mrb[0].mxu0 }
 0x1fd   : > { %v578_v43 = vadd.f32 %v577_v42, %v505_v41  ;;  %v579_v44 = vpop.f32.mrb[1].mxu0 }
 0x1fe   : > { %v580_v45 = vadd.f32 %v579_v44, %v505_v41 }
 0x1ff   : > { %582 = vst [vmem:[%s286_s14] sm:$0xff] %v578_v43  ;;  %v586_v46 = vmul.f32 %v578_v43, %v578_v43  ;;  %590 = vst [vmem:[%s291_s17] sm:$0xff] %v578_v43 }
 0x200   : > { %583 = vst [vmem:[%s286_s14 + $0x8] sm:$0xff] %v580_v45  ;;  %v587_v47 = vmul.f32 %v580_v45, %v580_v45  ;;  %591 = vst [vmem:[%s291_s17 + $0x8] sm:$0xff] %v580_v45 }
 0x201   : > { %592 = vst [vmem:[%s291_s17 + $0x10] sm:$0xff] %v586_v46 }
 0x202   : > { %593 = vst [vmem:[%s291_s17 + $0x18] sm:$0xff] %v587_v47 }
 0x203 PF: > { %s18_s24 = sadd.s32 1, %s742_s24  }
 0x204   : > { %p15_p4 = scmp.ge.s32.totalorder %s18_s24, 4  }
 0x206   :  { %17 = sbr.rel (!%p15_p4) target bundleno = 1 (0x1), region = 86 }

</bundles_post_ra>
